<compile_context>
chip_gen: v6e
topology: v6e:2x2x1
jax: 0.10.0
libtpu: 0.0.40
codegen_flags: <defaults>
</compile_context>

<pallas_src>
import functools

import jax
import jax.numpy as jnp
from jax.experimental import pallas as pl
from jax.experimental.pallas import tpu as pltpu


def _round_up(x, m):
    return ((x + m - 1) // m) * m


# ----------------------------- Pallas kernel -------------------------------
def _conv_gemm_kernel(p_ref, w_ref, b_ref, o_ref, *, apply_act):
    # p_ref: (TM, CKK_pad)   bf16 im2col patch tile
    # w_ref: (CKK_pad, K_pad) bf16 conv weight (resident across grid steps)
    # b_ref: (1, K_pad)       f32 bias
    # o_ref: (TM, K_pad)      f32 output tile
    acc = jnp.dot(p_ref[...], w_ref[...], preferred_element_type=jnp.float32)
    acc = acc + b_ref[...]
    if apply_act:
        # LeakyReLU, negative_slope = 0.01 (PyTorch default)
        acc = jnp.where(acc > 0, acc, 0.01 * acc)
    o_ref[...] = acc.astype(o_ref.dtype)


def _conv_gemm(patches, w2d, bias2d, *, apply_act, tm):
    # patches: (M_pad, CKK_pad) bf16, M_pad % tm == 0, CKK_pad % 128 == 0
    # w2d:     (CKK_pad, K_pad) bf16, K_pad % 128 == 0
    # bias2d:  (1, K_pad)       f32
    M_pad, CKK_pad = patches.shape
    K_pad = w2d.shape[1]
    grid_m = M_pad // tm

    # VMEM budget: double-buffered patch + output tiles, resident weight/bias.
    need = (2 * (tm * CKK_pad * 2 + tm * K_pad * 4)
            + 2 * CKK_pad * K_pad * 2 + 2 * K_pad * 4)
    vmem_limit = int(min(max(4 * need, 16 * 2 ** 20), 32 * 2 ** 20))

    kernel = functools.partial(_conv_gemm_kernel, apply_act=apply_act)
    return pl.pallas_call(
        kernel,
        out_shape=jax.ShapeDtypeStruct((M_pad, K_pad), jnp.float32),
        grid_spec=pltpu.PrefetchScalarGridSpec(
            num_scalar_prefetch=0,
            grid=(grid_m,),
            in_specs=[
                pl.BlockSpec((tm, CKK_pad), lambda i: (i, 0)),
                pl.BlockSpec((CKK_pad, K_pad), lambda i: (0, 0)),
                pl.BlockSpec((1, K_pad), lambda i: (0, 0)),
            ],
            out_specs=pl.BlockSpec((tm, K_pad), lambda i: (i, 0)),
        ),
        compiler_params=pltpu.CompilerParams(
            dimension_semantics=("parallel",),
            vmem_limit_bytes=vmem_limit,
        ),
    )(patches, w2d, bias2d)


# ------------------------------ glue (JAX) ---------------------------------
def _im2col(x, kh, kw, stride, pad):
    """x: (N, C, H, W) -> patches: (N*OH*OW, C*kh*kw), channel-major
    (matches torch weight.reshape(K, C*kh*kw) ordering)."""
    N, C, H, W = x.shape
    xp = jnp.pad(x, ((0, 0), (0, 0), (pad, pad), (pad, pad)))
    OH = (H + 2 * pad - kh) // stride + 1
    OW = (W + 2 * pad - kw) // stride + 1
    cols = []
    for i in range(kh):
        for j in range(kw):
            cols.append(xp[:, :, i:i + stride * OH:stride,
                             j:j + stride * OW:stride])  # (N, C, OH, OW)
    patches = jnp.stack(cols, axis=2)                    # (N, C, kh*kw, OH, OW)
    patches = patches.reshape(N, C * kh * kw, OH, OW)
    patches = patches.transpose(0, 2, 3, 1).reshape(N * OH * OW, C * kh * kw)
    return patches, OH, OW


def conv2d_module(x, weight, bias, *, stride=2, padding=1, last=False,
                  tm=1024, nhwc_out=False):
    """Forward of the PyTorch Conv2D module (conv [+ LeakyReLU unless last]).
    x: (N, C, H, W) f32; weight: (K, C, kh, kw); bias: (K,).
    Returns (N, K, OH, OW)  (or (N, OH, OW, K) if nhwc_out=True)."""
    N, C, H, W = x.shape
    K, _, kh, kw = weight.shape

    patches, OH, OW = _im2col(x, kh, kw, stride, padding)   # (M, CKK) f32
    M, CKK = patches.shape

    # Pad to MXU / lane-friendly shapes.
    CKK_pad = _round_up(CKK, 128)
    K_pad = _round_up(K, 128)
    TM = _round_up(min(tm, _round_up(M, 128)), 128)
    M_pad = _round_up(M, TM)

    patches_b = jnp.pad(
        patches, ((0, M_pad - M), (0, CKK_pad - CKK))).astype(jnp.bfloat16)
    w2d = weight.reshape(K, CKK).T                            # (CKK, K)
    w2d_b = jnp.pad(
        w2d, ((0, CKK_pad - CKK), (0, K_pad - K))).astype(jnp.bfloat16)
    bias2d = jnp.pad(
        bias.reshape(1, K).astype(jnp.float32), ((0, 0), (0, K_pad - K)))

    out = _conv_gemm(patches_b, w2d_b, bias2d,
                     apply_act=not last, tm=TM)               # (M_pad, K_pad)
    out = out[:M, :K].reshape(N, OH, OW, K)                   # NHWC
    if nhwc_out:
        return out
    return out.transpose(0, 3, 1, 2)                          # NCHW


# ----------------------------- param init ----------------------------------
def init_params(key, n_channels, n_kernels, kernel_size=3):
    kw_key, kb_key = jax.random.split(key)
    fan_in = n_channels * kernel_size * kernel_size
    fan_out = n_kernels * kernel_size * kernel_size
    # xavier_uniform_ on weight
    bound_w = (6.0 / (fan_in + fan_out)) ** 0.5
    weight = jax.random.uniform(
        kw_key, (n_kernels, n_channels, kernel_size, kernel_size),
        dtype=jnp.float32, minval=-bound_w, maxval=bound_w)
    # default PyTorch Conv2d bias init: U(-1/sqrt(fan_in), 1/sqrt(fan_in))
    bound_b = 1.0 / (fan_in ** 0.5)
    bias = jax.random.uniform(kb_key, (n_kernels,), dtype=jnp.float32,
                              minval=-bound_b, maxval=bound_b)
    return weight, bias


def _conv_ref(x, weight, bias, stride, pad):
    ref = jax.lax.conv_general_dilated(
        x, weight, window_strides=(stride, stride),
        padding=((pad, pad), (pad, pad)),
        dimension_numbers=("NCHW", "OIHW", "NCHW"),
        precision=jax.lax.Precision.HIGHEST)
    return ref + bias.reshape(1, -1, 1, 1)


if __name__ == "__main__":
    key = jax.random.PRNGKey(0)
    kx, kp = jax.random.split(key)

    N, C, H, W = 2, 4, 16, 16
    Kout, ksize, stride, pad = 8, 3, 2, 1

    x = jax.random.normal(kx, (N, C, H, W), dtype=jnp.float32)
    weight, bias = init_params(kp, C, Kout, ksize)

    # --- kernel runs -------------------------------------------------------
    y = conv2d_module(x, weight, bias, stride=stride, padding=pad, last=False)
    y = jax.block_until_ready(y)
    assert y.shape == (N, Kout, H // stride, W // stride), y.shape

    y_last = conv2d_module(x, weight, bias, stride=stride, padding=pad,
                           last=True)
    y_last = jax.block_until_ready(y_last)

    # --- tight check vs a reference using the same bf16 operand quantization
    xq = x.astype(jnp.bfloat16).astype(jnp.float32)
    wq = weight.astype(jnp.bfloat16).astype(jnp.float32)
    ref_q = _conv_ref(xq, wq, bias, stride, pad)
    ref_q_act = jnp.where(ref_q > 0, ref_q, 0.01 * ref_q)
    assert jnp.max(jnp.abs(y - ref_q_act)) < 1e-4, \
        float(jnp.max(jnp.abs(y - ref_q_act)))
    assert jnp.max(jnp.abs(y_last - ref_q)) < 1e-4, \
        float(jnp.max(jnp.abs(y_last - ref_q)))

    # --- loose sanity vs full-f32 reference (bounds bf16 quantization cost)
    ref_f = _conv_ref(x, weight, bias, stride, pad)
    ref_f_act = jnp.where(ref_f > 0, ref_f, 0.01 * ref_f)
    assert jnp.max(jnp.abs(y - ref_f_act)) < 1e-1, \
        float(jnp.max(jnp.abs(y - ref_f_act)))

    print("KERNEL_OK")
</pallas_src>

<mosaic_0001>
module attributes {stable_mosaic.version = 11 : i64} {
  func.func @_conv_gemm_kernel(%arg0: i32, %arg1: memref<128x128xbf16, #tpu.memory_space<vmem>>, %arg2: memref<128x128xbf16, #tpu.memory_space<vmem>>, %arg3: memref<1x128xf32, #tpu.memory_space<vmem>>, %arg4: memref<128x128xf32, #tpu.memory_space<vmem>>) attributes {dimension_semantics = [#tpu.dimension_semantics<parallel>], iteration_bounds = array<i64: 1>, scalar_prefetch = 0 : i64, scratch_operands = 0 : i64, tpu.core_type = #tpu.core_type<tc>, window_params = [{transform_indices = @transform_0, window_bounds = array<i64: 128, 128>}, {pipeline_mode = #tpu.pipeline_mode<synchronous>, transform_indices = @transform_1, window_bounds = array<i64: 128, 128>}, {pipeline_mode = #tpu.pipeline_mode<synchronous>, transform_indices = @transform_2, window_bounds = array<i64: 1, 128>}, {transform_indices = @transform_3, window_bounds = array<i64: 128, 128>}]} {
    %c0 = arith.constant 0 : index
    %c0_0 = arith.constant 0 : index
    %0 = vector.load %arg1[%c0, %c0_0] : memref<128x128xbf16, #tpu.memory_space<vmem>>, vector<128x128xbf16>
    %c0_1 = arith.constant 0 : index
    %c0_2 = arith.constant 0 : index
    %1 = vector.load %arg2[%c0_1, %c0_2] : memref<128x128xbf16, #tpu.memory_space<vmem>>, vector<128x128xbf16>
    %cst = arith.constant dense<0.000000e+00> : vector<128x128xf32>
    %2 = tpu.matmul %0, %1, %cst {dimension_numbers = #tpu.dot_dimension_numbers<[1], [0], [0], [1], [0, 0, 1, 1], [], []>} : vector<128x128xbf16>, vector<128x128xbf16>, vector<128x128xf32> -> vector<128x128xf32>
    %c0_3 = arith.constant 0 : index
    %c0_4 = arith.constant 0 : index
    %3 = vector.load %arg3[%c0_3, %c0_4] : memref<1x128xf32, #tpu.memory_space<vmem>>, vector<1x128xf32>
    %4 = vector.broadcast %3 : vector<1x128xf32> to vector<128x128xf32>
    %5 = arith.addf %2, %4 : vector<128x128xf32>
    %cst_5 = arith.constant 0.000000e+00 : f32
    %6 = vector.broadcast %cst_5 : f32 to vector<128x128xf32>
    %7 = arith.cmpf ogt, %5, %6 : vector<128x128xf32>
    %cst_6 = arith.constant 0.00999999977 : f32
    %8 = vector.broadcast %cst_6 : f32 to vector<128x128xf32>
    %9 = arith.mulf %8, %5 : vector<128x128xf32>
    %10 = arith.select %7, %5, %9 : vector<128x128xi1>, vector<128x128xf32>
    %c0_7 = arith.constant 0 : index
    %c0_8 = arith.constant 0 : index
    %11 = vector.load %arg4[%c0_7, %c0_8] : memref<128x128xf32, #tpu.memory_space<vmem>>, vector<128x128xf32>
    tpu.vector_store %arg4[%c0_7, %c0_8], %10 {strides = array<i32>} : memref<128x128xf32, #tpu.memory_space<vmem>>, vector<128x128xf32>,
    return
  }
  func.func @transform_0(%arg0: i32) -> (i32, i32) {
    %c0_i32 = arith.constant 0 : i32
    %c0_i32_0 = arith.constant 0 : i32
    return %arg0, %c0_i32 : i32, i32
  }
  func.func @transform_1(%arg0: i32) -> (i32, i32) {
    %c0_i32 = arith.constant 0 : i32
    %c0_i32_0 = arith.constant 0 : i32
    %c0_i32_1 = arith.constant 0 : i32
    return %c0_i32, %c0_i32_0 : i32, i32
  }
  func.func @transform_2(%arg0: i32) -> (i32, i32) {
    %c0_i32 = arith.constant 0 : i32
    %c0_i32_0 = arith.constant 0 : i32
    %c0_i32_1 = arith.constant 0 : i32
    return %c0_i32, %c0_i32_0 : i32, i32
  }
  func.func @transform_3(%arg0: i32) -> (i32, i32) {
    %c0_i32 = arith.constant 0 : i32
    %c0_i32_0 = arith.constant 0 : i32
    return %arg0, %c0_i32 : i32, i32
  }
}

</mosaic_0001>

<bundles_post_ra>
// kernel: tpu_custom_call.1
= control target key start
LH: loop header
LB: loop body
LE: loop exit
PB: predicated region body
PF: predicated region fallthrough
CT: control target
= control target key end

     0   :  { %8 = vsyncpa [#allocation3], 0  ;;  %s585_s0 = inlined_call_operand.hbm [shape: bf16[128,128], index: 0, kind: input, shape index: {}]   ;;  %s586_s1 = inlined_call_operand.hbm [shape: bf16[128,128], index: 1, kind: input, shape index: {}]   ;;  %s587_s2 = inlined_call_operand.vmem [shape: f32[1,128], index: 2, kind: input, shape index: {}]   ;;  %s588_s3 = inlined_call_operand.hbm [shape: f32[128,128], index: 3, kind: output, shape index: {}]  }
   0x1   :  { %9 = vsyncpa [#allocation6], 0 }
   0x2   :  { %10 = vsyncpa [#allocation4], 0  ;;  %s528_s12 = smov [#allocation2]  }
   0x3   :  { %s16_s13 = sshll.u32 %s528_s12, 4  ;;  %s17_s13 = int_to_ptr.vmem [resolvable:$true] %s16_s13 }
   0x4   :  { %s470_s14 = scalar_lea.vmem %s17_s13, 1024  ;;  %p475_p1 = scmp.lt.s32.totalorder %s17_s13, %s17_s13 }
   0x5   :  { %p471_p0 = scmp.ne.s32.totalorder %s17_s13, %s470_s14  ;;  %p476_p2 = scmp.lt.s32.totalorder %s470_s14, %s470_s14 }
   0x7   :  { %p477_p3 = por %p476_p2, %p475_p1 }
   0x9   :  { %p478_p4 = pnand %p477_p3, %p471_p0 }
   0xb   :  { %481 = shalt.err (!%p478_p4)
}
   0xc   :  { %s529_s15 = smov 64   ;;  %s530_s16 = smov 4  }
   0xd   :  { %22 = dma.hbm_to_vmem [thread:$0]  %s585_s0, 1024, %s17_s13, [#allocation3], %s529_s15, %s529_s15, %s530_s16  }
   0xe   :  { %s531_s19 = smov [#allocation5]  }
   0xf   :  { %s28_s20 = sshll.u32 %s531_s19, 4  ;;  %s29_s20 = int_to_ptr.vmem [resolvable:$true] %s28_s20 }
  0x10   :  { %s490_s21 = scalar_lea.vmem %s29_s20, 1024  ;;  %p495_p6 = scmp.lt.s32.totalorder %s29_s20, %s29_s20 }
  0x11   :  { %p491_p5 = scmp.ne.s32.totalorder %s29_s20, %s490_s21  ;;  %p496_p7 = scmp.lt.s32.totalorder %s490_s21, %s490_s21 }
  0x13   :  { %p497_p8 = por %p496_p7, %p495_p6 }
  0x15   :  { %p498_p9 = pnand %p497_p8, %p491_p5 }
  0x17   :  { %501 = shalt.err (!%p498_p9)
}
  0x18   :  { %34 = dma.hbm_to_vmem [thread:$0]  %s586_s1, 1024, %s29_s20, [#allocation6], %s529_s15, %s529_s15, %s530_s16  }
  0x19   :  { %522 = dma.done.wait [#allocation3], 1024  }
  0x1a   :  { %523 = vsyncadd [#allocation3], 4294966272 }
  0x1b   :  { %524 = dma.done.wait [#allocation6], 1024  }
  0x1c   :  { %525 = vsyncadd [#allocation6], 4294966272  ;;  %v446_v0 = vld [vmem:[#allocation5 + $0x38] sm:$0xff]   ;;  %v447_v1 = vld [vmem:[#allocation5 + $0x30] sm:$0xff]  }
  0x1d   :  { %391 = vmatprep.subr.bf16.mxu0 %v446_v0  ;;  %423 = vmatprep.subr.bf16.mxu1 %v446_v0  ;;  %v448_v2 = vld [vmem:[#allocation5 + $0x28] sm:$0xff]   ;;  %v449_v3 = vld [vmem:[#allocation5 + $0x20] sm:$0xff]   ;;  %v450_v6 = vld [vmem:[#allocation5 + $0x18] sm:$0xff]  }
  0x1e   :  { %392 = vmatpush3.bf16.msra.mxu0 %v446_v0  ;;  %431 = vmatpush3.bf16.msra.mxu1 %v446_v0  ;;  %v454_v4 = vld [vmem:[#allocation2] sm:$0xff]   ;;  %v451_v7 = vld [vmem:[#allocation5 + $0x10] sm:$0xff]   ;;  %v452_v8 = vld [vmem:[#allocation5 + $0x8] sm:$0xff]  }
  0x1f   :  { %393 = vmatprep.subr.bf16.mxu0 %v447_v1  ;;  %424 = vmatprep.subr.bf16.mxu1 %v447_v1  ;;  %v455_v5 = vld [vmem:[#allocation2 + $0x20] sm:$0xff]   ;;  %v456_v10 = vld [vmem:[#allocation2 + $0x8] sm:$0xff]   ;;  %v458_v12 = vld [vmem:[#allocation2 + $0x10] sm:$0xff]  }
  0x20   :  { %407 = vmatprep.mubr.bf16.mxu0 %v454_v4  ;;  %415 = vmatprep.mubr.bf16.mxu1 %v455_v5  ;;  %v453_v9 = vld [vmem:[#allocation5] sm:$0xff]   ;;  %v457_v11 = vld [vmem:[#allocation2 + $0x28] sm:$0xff]   ;;  %v459_v13 = vld [vmem:[#allocation2 + $0x30] sm:$0xff]  }
  0x21   :  { %v460_v14 = vld [vmem:[#allocation2 + $0x18] sm:$0xff]   ;;  %v564_v16 = vld [vmem:[%s587_s2] ss:$0 sm:$0xff]  ;;  %s532_s2 = smov [#allocation7]  }
  0x22   :  { %394 = vmatpush3.bf16.msra.mxu0 %v447_v1  ;;  %432 = vmatpush3.bf16.msra.mxu1 %v447_v1  ;;  %v461_v15 = vld [vmem:[#allocation2 + $0x38] sm:$0xff]   ;;  %s345_s24 = sshll.u32 %s532_s2, 4  ;;  %s346_s24 = int_to_ptr.vmem [resolvable:$true] %s345_s24 }
  0x23   :  { %395 = vmatprep.subr.bf16.mxu0 %v448_v2  ;;  %425 = vmatprep.subr.bf16.mxu1 %v448_v2  ;;  %s502_s25 = scalar_lea.vmem %s346_s24, 2048  ;;  %p507_p11 = scmp.lt.s32.totalorder %s346_s24, %s346_s24 }
  0x24   :  { %p503_p10 = scmp.ne.s32.totalorder %s346_s24, %s502_s25  ;;  %p508_p12 = scmp.lt.s32.totalorder %s502_s25, %s502_s25 }
  0x26   :  { %396 = vmatpush3.bf16.msra.mxu0 %v448_v2  ;;  %433 = vmatpush3.bf16.msra.mxu1 %v448_v2  ;;  %p509_p13 = por %p508_p12, %p507_p11 }
  0x27   :  { %397 = vmatprep.subr.bf16.mxu0 %v449_v3  ;;  %426 = vmatprep.subr.bf16.mxu1 %v449_v3 }
  0x28   :  { %p510_p0 = pnand %p509_p13, %p503_p10 }
  0x2a   :  { %398 = vmatpush3.bf16.msra.mxu0 %v449_v3  ;;  %434 = vmatpush3.bf16.msra.mxu1 %v449_v3 }
  0x2b   :  { %399 = vmatprep.subr.bf16.mxu0 %v450_v6  ;;  %427 = vmatprep.subr.bf16.mxu1 %v450_v6 }
  0x2e   :  { %400 = vmatpush3.bf16.msra.mxu0 %v450_v6  ;;  %435 = vmatpush3.bf16.msra.mxu1 %v450_v6 }
  0x2f   :  { %401 = vmatprep.subr.bf16.mxu0 %v451_v7  ;;  %428 = vmatprep.subr.bf16.mxu1 %v451_v7 }
  0x32   :  { %402 = vmatpush3.bf16.msra.mxu0 %v451_v7  ;;  %436 = vmatpush3.bf16.msra.mxu1 %v451_v7 }
  0x33   :  { %403 = vmatprep.subr.bf16.mxu0 %v452_v8  ;;  %429 = vmatprep.subr.bf16.mxu1 %v452_v8 }
  0x36   :  { %404 = vmatpush3.bf16.msra.mxu0 %v452_v8  ;;  %437 = vmatpush3.bf16.msra.mxu1 %v452_v8 }
  0x37   :  { %405 = vmatprep.subr.bf16.mxu0 %v453_v9  ;;  %430 = vmatprep.subr.bf16.mxu1 %v453_v9 }
  0x3a   :  { %406 = vmatpush3.bf16.msra.mxu0 %v453_v9  ;;  %438 = vmatpush3.bf16.msra.mxu1 %v453_v9 }
  0x3d   :  { %408 = vmatmul.mubr.bf16.vlgmr.msra.gmra.mxu0 %v456_v10  ;;  %416 = vmatmul.mubr.bf16.vlgmr.msra.gmra.mxu1 %v457_v11 }
  0x3e   :  { %411 = vmatprep.mubr.bf16.mxu0 %v458_v12  ;;  %419 = vmatprep.mubr.bf16.mxu1 %v459_v13 }
  0x45   :  { %412 = vmatmul.mubr.bf16.gmra.mxu0 %v460_v14  ;;  %420 = vmatmul.mubr.bf16.gmra.mxu1 %v461_v15 }
  0xfd   :  { %v409_v17 = vpop.f32.mrf.mxu0  ;;  %v417_v18 = vpop.f32.mrf.mxu1 }
  0xfe   :  { %v222_v19 = vadd.f32 %v409_v17, %v564_v16  ;;  %v254_v20 = vadd.f32 %v417_v18, %v564_v16 }
  0xff   :  { %v213_v21 = vpop.f32.mrf.mxu0  ;;  %v245_v22 = vpop.f32.mrf.mxu1 }
 0x100   :  { %vm278_vm0 = vcmp.gt.f32.partialorder %v222_v19, 0.0  ;;  %v294_v23 = vmul.f32 0.01, %v222_v19  ;;  %vm286_vm1 = vcmp.gt.f32.partialorder %v254_v20, 0.0  ;;  %v302_v24 = vmul.f32 0.01, %v254_v20 }
 0x101   :  { %v214_v25 = vadd.f32 %v564_v16, %v213_v21  ;;  %v246_v26 = vadd.f32 %v564_v16, %v245_v22  ;;  %v410_v27 = vpop.f32.mrf.mxu0  ;;  %v418_v28 = vpop.f32.mrf.mxu1 }
 0x102   :  { %v310_v29 = vsel %vm278_vm0, %v222_v19, %v294_v23  ;;  %v318_v30 = vsel %vm286_vm1, %v254_v20, %v302_v24  ;;  %v225_v31 = vadd.f32 %v410_v27, %v564_v16  ;;  %v257_v32 = vadd.f32 %v418_v28, %v564_v16 }
 0x103   :  { %326 = vst [vmem:[#allocation7 + $0x10] sm:$0xff] %v310_v29  ;;  %334 = vst [vmem:[#allocation7 + $0x50] sm:$0xff] %v318_v30  ;;  %vm276_vm2 = vcmp.gt.f32.partialorder %v214_v25, 0.0  ;;  %v292_v33 = vmul.f32 0.01, %v214_v25  ;;  %vm284_vm3 = vcmp.gt.f32.partialorder %v246_v26, 0.0  ;;  %v216_v35 = vpop.f32.mrf.mxu0  ;;  %v248_v36 = vpop.f32.mrf.mxu1 }
 0x104   :  { %v300_v34 = vmul.f32 0.01, %v246_v26  ;;  %vm279_vm4 = vcmp.gt.f32.partialorder %v225_v31, 0.0  ;;  %v295_v37 = vmul.f32 0.01, %v225_v31  ;;  %vm287_vm5 = vcmp.gt.f32.partialorder %v257_v32, 0.0 }
 0x105   :  { %v303_v38 = vmul.f32 0.01, %v257_v32  ;;  %v308_v39 = vsel %vm276_vm2, %v214_v25, %v292_v33  ;;  %v217_v41 = vadd.f32 %v564_v16, %v216_v35  ;;  %v249_v42 = vadd.f32 %v564_v16, %v248_v36  ;;  %v413_v43 = vpop.f32.mrf.mxu0  ;;  %v421_v44 = vpop.f32.mrf.mxu1 }
 0x106   :  { %v316_v40 = vsel %vm284_vm3, %v246_v26, %v300_v34  ;;  %324 = vst [vmem:[#allocation7] sm:$0xff] %v308_v39  ;;  %v311_v45 = vsel %vm279_vm4, %v225_v31, %v295_v37  ;;  %v238_v47 = vadd.f32 %v413_v43, %v564_v16  ;;  %v270_v48 = vadd.f32 %v421_v44, %v564_v16 }
 0x107   :  { %332 = vst [vmem:[#allocation7 + $0x40] sm:$0xff] %v316_v40  ;;  %v319_v46 = vsel %vm287_vm5, %v257_v32, %v303_v38  ;;  %327 = vst [vmem:[#allocation7 + $0x18] sm:$0xff] %v311_v45  ;;  %vm277_vm6 = vcmp.gt.f32.partialorder %v217_v41, 0.0  ;;  %v293_v49 = vmul.f32 0.01, %v217_v41  ;;  %vm285_vm7 = vcmp.gt.f32.partialorder %v249_v42, 0.0  ;;  %v229_v51 = vpop.f32.mrf.mxu0  ;;  %v261_v52 = vpop.f32.mrf.mxu1 }
 0x108   :  { %335 = vst [vmem:[#allocation7 + $0x58] sm:$0xff] %v319_v46  ;;  %v301_v50 = vmul.f32 0.01, %v249_v42  ;;  %vm282_vm8 = vcmp.gt.f32.partialorder %v238_v47, 0.0  ;;  %v298_v53 = vmul.f32 0.01, %v238_v47  ;;  %v230_v57 = vadd.f32 %v564_v16, %v229_v51 }
 0x109   :  { %vm290_vm9 = vcmp.gt.f32.partialorder %v270_v48, 0.0  ;;  %v306_v54 = vmul.f32 0.01, %v270_v48  ;;  %v309_v55 = vsel %vm277_vm6, %v217_v41, %v293_v49  ;;  %v262_v58 = vadd.f32 %v564_v16, %v261_v52  ;;  %v414_v59 = vpop.f32.mrf.mxu0  ;;  %v422_v60 = vpop.f32.mrf.mxu1 }
 0x10a   :  { %v317_v56 = vsel %vm285_vm7, %v249_v42, %v301_v50  ;;  %325 = vst [vmem:[#allocation7 + $0x8] sm:$0xff] %v309_v55  ;;  %v314_v61 = vsel %vm282_vm8, %v238_v47, %v298_v53  ;;  %v241_v63 = vadd.f32 %v414_v59, %v564_v16  ;;  %v273_v0 = vadd.f32 %v422_v60, %v564_v16 }
 0x10b   :  { %333 = vst [vmem:[#allocation7 + $0x48] sm:$0xff] %v317_v56  ;;  %v322_v62 = vsel %vm290_vm9, %v270_v48, %v306_v54  ;;  %330 = vst [vmem:[#allocation7 + $0x30] sm:$0xff] %v314_v61  ;;  %vm280_vm10 = vcmp.gt.f32.partialorder %v230_v57, 0.0  ;;  %v296_v1 = vmul.f32 0.01, %v230_v57  ;;  %vm288_vm11 = vcmp.gt.f32.partialorder %v262_v58, 0.0  ;;  %v232_v3 = vpop.f32.mrf.mxu0  ;;  %v264_v4 = vpop.f32.mrf.mxu1 }
 0x10c   :  { %338 = vst [vmem:[#allocation7 + $0x70] sm:$0xff] %v322_v62  ;;  %v304_v2 = vmul.f32 0.01, %v262_v58  ;;  %vm283_vm12 = vcmp.gt.f32.partialorder %v241_v63, 0.0  ;;  %v299_v5 = vmul.f32 0.01, %v241_v63  ;;  %v233_v9 = vadd.f32 %v564_v16, %v232_v3 }
 0x10d   :  { %vm291_vm13 = vcmp.gt.f32.partialorder %v273_v0, 0.0  ;;  %v307_v6 = vmul.f32 0.01, %v273_v0  ;;  %v312_v7 = vsel %vm280_vm10, %v230_v57, %v296_v1  ;;  %v265_v10 = vadd.f32 %v564_v16, %v264_v4 }
 0x10e   :  { %v320_v8 = vsel %vm288_vm11, %v262_v58, %v304_v2  ;;  %328 = vst [vmem:[#allocation7 + $0x20] sm:$0xff] %v312_v7  ;;  %v315_v11 = vsel %vm283_vm12, %v241_v63, %v299_v5  ;;  %vm281_vm14 = vcmp.gt.f32.partialorder %v233_v9, 0.0  ;;  %v297_v13 = vmul.f32 0.01, %v233_v9 }
 0x10f   :  { %336 = vst [vmem:[#allocation7 + $0x60] sm:$0xff] %v320_v8  ;;  %v323_v12 = vsel %vm291_vm13, %v273_v0, %v307_v6  ;;  %331 = vst [vmem:[#allocation7 + $0x38] sm:$0xff] %v315_v11  ;;  %vm289_vm15 = vcmp.gt.f32.partialorder %v265_v10, 0.0  ;;  %v305_v14 = vmul.f32 0.01, %v265_v10 }
 0x110   :  { %339 = vst [vmem:[#allocation7 + $0x78] sm:$0xff] %v323_v12  ;;  %v313_v15 = vsel %vm281_vm14, %v233_v9, %v297_v13 }
 0x111   :  { %v321_v17 = vsel %vm289_vm15, %v265_v10, %v305_v14  ;;  %329 = vst [vmem:[#allocation7 + $0x28] sm:$0xff] %v313_v15 }
 0x112   :  { %337 = vst [vmem:[#allocation7 + $0x68] sm:$0xff] %v321_v17 }
 0x113   :  { %513 = shalt.err (!%p510_p0)
}
 0x114   :  { %s533_s26 = smov 128   ;;  %s534_s27 = smov 8  }
 0x115   :  { %351 = dma.vmem_to_hbm [thread:$0]  %s346_s24, 2048, %s588_s3, [#allocation4], %s533_s26, %s533_s26, %s534_s27  }
 0x116   :  { %526 = dma.done.wait [#allocation4], 2048  }
 0x117   :  { %527 = vsyncadd [#allocation4], 4294965248 }
 0x118   :  { %355 = vsyncpa [#allocation3], 1 }
 0x119   :  { %356 = vsyncpa [#allocation6], 1 }
 0x11a   :  { %357 = vsyncpa [#allocation4], 1 }

</bundles_post_ra>
